<compile_context>
chip_gen: v5e
topology: v5e:2x2
jax: 0.10.0
libtpu: 0.0.40
codegen_flags: <defaults>
</compile_context>

<pallas_src>
import math
from functools import partial

import jax
import jax.numpy as jnp
from jax.experimental import pallas as pl
from jax.experimental.pallas import tpu as pltpu

LANE = 128
SUBLANE = 8
TB_CAP = 512   # per-step batch tile cap (review: 512-1024; pipeline overhead amortized)


def _round_up(n, m):
    return ((n + m - 1) // m) * m


# ------------------------------- kernel --------------------------------------

def mlpnet_kernel(x_ref, w_ref, b_ref, o_ref, *, n_layers, width, out_width,
                  compute_dtype):
    """Fused MLPNet forward: one chain of lane-dense matmuls.

    Layer i's weight lives at rows [i*width, (i+1)*width) of the weight slab,
    its bias at row i of the bias slab.  Layer 0 contracts only over the real
    input width (x is not lane-padded to `width`); the last (fused rot/tsl
    output) layer produces only `out_width` lanes.  ReLU follows every layer
    except the last.  Matmul operands are `compute_dtype` (f32 or bf16),
    accumulation / bias / ReLU are f32.
    """
    h = x_ref[...].astype(jnp.float32)
    for i in range(n_layers):
        k = h.shape[-1]                                   # contraction width
        n_out = out_width if i == n_layers - 1 else width
        w = w_ref[pl.ds(i * width, k), pl.ds(0, n_out)]   # static slab slice
        b = b_ref[pl.ds(i, 1), pl.ds(0, n_out)]           # (1, n_out), broadcasts
        h = jnp.dot(h.astype(compute_dtype), w,
                    preferred_element_type=jnp.float32)
        h = h + b.astype(jnp.float32)
        if i < n_layers - 1:
            h = jnp.maximum(h, 0.0)
    o_ref[...] = h.astype(o_ref.dtype)


# ----------------------- parameter construction (plain JAX) ------------------

def init_linear(key, fan_in, fan_out):
    """Deterministic PyTorch-style (uniform +-1/sqrt(fan_in)) init.

    Weights are stored (in_features, out_features) so y = x @ W + b matches
    torch.nn.Linear's y = x @ W.T + b.
    """
    kw, kb = jax.random.split(key)
    bound = 1.0 / math.sqrt(fan_in)
    w = jax.random.uniform(kw, (fan_in, fan_out), jnp.float32, -bound, bound)
    b = jax.random.uniform(kb, (1, fan_out), jnp.float32, -bound, bound)
    return w, b


def make_mlpnet_params(key, head_dims, sub_dims):
    assert head_dims[-1] == sub_dims[0]
    n_keys = (len(head_dims) - 1) + 2 * (len(sub_dims) - 1)
    keys = jax.random.split(key, n_keys)
    k = 0
    head_params = []
    for i in range(len(head_dims) - 1):
        head_params.append(init_linear(keys[k], head_dims[i], head_dims[i + 1]))
        k += 1
    rot_params = []
    for i in range(len(sub_dims) - 1):
        rot_params.append(init_linear(keys[k], sub_dims[i], sub_dims[i + 1]))
        k += 1
    tsl_params = []
    for i in range(len(sub_dims) - 1):
        tsl_params.append(init_linear(keys[k], sub_dims[i], sub_dims[i + 1]))
        k += 1
    return head_params, rot_params, tsl_params


# -------------------- host-side fusion + slab packing ------------------------

def fuse_and_pack(head_params, rot_params, tsl_params, *, lane=LANE,
                  param_dtype=jnp.float32):
    """Fuse rot/tsl branches and pack all params into two lane-padded slabs.

    Returns (w_slab [n_layers*width, width] in param_dtype,
             b_slab [n_layers, width] f32, width, out_dim).
    Zero padding keeps the chain exact: padded input lanes are zero, padded
    weight rows/cols and bias entries are zero, and ReLU(0) == 0, so padded
    lanes stay identically zero through every layer.
    """
    fused = list(head_params)                      # head layers unchanged
    n_branch = len(rot_params)
    for i in range(n_branch):
        wr, br = rot_params[i]
        wt, bt = tsl_params[i]
        if i == 0:
            # both branches read the same head output -> hstack outputs
            w = jnp.concatenate([wr, wt], axis=1)
        else:
            # branches are independent from here on -> block diagonal
            top = jnp.concatenate(
                [wr, jnp.zeros((wr.shape[0], wt.shape[1]), wr.dtype)], axis=1)
            bot = jnp.concatenate(
                [jnp.zeros((wt.shape[0], wr.shape[1]), wt.dtype), wt], axis=1)
            w = jnp.concatenate([top, bot], axis=0)
        b = jnp.concatenate([br, bt], axis=1)
        fused.append((w, b))

    width = _round_up(max(max(w.shape) for w, _ in fused), lane)
    n_layers = len(fused)

    w_slab = jnp.zeros((n_layers * width, width), param_dtype)
    b_slab = jnp.zeros((n_layers, width), jnp.float32)
    for i, (w, b) in enumerate(fused):
        w_slab = w_slab.at[i * width:i * width + w.shape[0], :w.shape[1]].set(
            w.astype(param_dtype))
        b_slab = b_slab.at[i, :b.shape[1]].set(b[0])

    out_dim = rot_params[-1][0].shape[1] + tsl_params[-1][0].shape[1]
    return w_slab, b_slab, width, out_dim


# ----------------------------- Pallas wrapper --------------------------------

def mlpnet_forward(x, w_slab, b_slab, *, width, out_dim):
    B, in_dim = x.shape
    n_layers = b_slab.shape[0]
    out_width = _round_up(out_dim, LANE)
    in_dim_p = _round_up(in_dim, SUBLANE)     # sublane-only pad (NOT to 128)

    # Batch tiling: big tiles (amortize ~0.35us/step), but prefer >=2 tiles so
    # the "parallel" axis can shard across v7x's 2 TensorCores; clamp to the
    # (sublane-padded) batch so tiny batches don't pay for wasted rows.
    rows = _round_up(B, SUBLANE)
    n_tiles = max(pl.cdiv(rows, TB_CAP), 2 if rows >= 2 * SUBLANE else 1)
    TB = _round_up(pl.cdiv(rows, n_tiles), SUBLANE)
    Bp = _round_up(rows, TB)

    # Row (and <=7-lane sublane) pad only when needed; no lane-pad to `width`.
    if (Bp, in_dim_p) != (B, in_dim):
        x_in = jnp.zeros((Bp, in_dim_p), x.dtype).at[:B, :in_dim].set(x)
    else:
        x_in = x

    # VMEM budget with headroom (double-buffered slabs + I/O tiles + f32
    # activation staging), clamped to a range that is legal on v5e/v6e/v7x.
    itemsize = jnp.dtype(x.dtype).itemsize
    slab_bytes = (w_slab.size * w_slab.dtype.itemsize
                  + b_slab.size * b_slab.dtype.itemsize)
    io_bytes = TB * (in_dim_p + out_width) * itemsize
    act_bytes = TB * width * 4
    vmem_limit = int(min(64 << 20,
                         max(32 << 20,
                             2 * (slab_bytes + io_bytes) + 4 * act_bytes + (8 << 20))))

    kernel = partial(mlpnet_kernel, n_layers=n_layers, width=width,
                     out_width=out_width, compute_dtype=w_slab.dtype)
    out = pl.pallas_call(
        kernel,
        out_shape=jax.ShapeDtypeStruct((Bp, out_width), x.dtype),
        grid=(Bp // TB,),
        in_specs=[
            # x tile: real feature width (sublane-padded only) -> no 4x read
            # amplification, no extra host-side HBM pass.
            pl.BlockSpec((TB, in_dim_p), lambda i: (i, 0)),
            # Parameter slabs: constant block index -> DMA'd once and kept
            # VMEM-resident across all batch-tile steps.
            pl.BlockSpec((n_layers * width, width), lambda i: (0, 0)),
            pl.BlockSpec((n_layers, width), lambda i: (0, 0)),
        ],
        # Output padded to round_up(out_dim, 128) lanes (decoupled from the
        # hidden width): still an unmasked lane-dense store.
        out_specs=pl.BlockSpec((TB, out_width), lambda i: (i, 0)),
        compiler_params=pltpu.CompilerParams(
            dimension_semantics=("parallel",),
            vmem_limit_bytes=vmem_limit),
    )(x_in, w_slab, b_slab)

    # Strip batch + lane padding (rot|tsl outputs occupy the first out_dim lanes).
    return out[:B, :out_dim]


# ------------------------------ pure-JAX reference ---------------------------

def mlpnet_reference(x, head_params, rot_params, tsl_params):
    h = x
    for w, b in head_params:
        h = jnp.maximum(h @ w + b, 0.0)
    rot = h
    for i, (w, b) in enumerate(rot_params):
        rot = rot @ w + b
        if i < len(rot_params) - 1:
            rot = jnp.maximum(rot, 0.0)
    tsl = h
    for i, (w, b) in enumerate(tsl_params):
        tsl = tsl @ w + b
        if i < len(tsl_params) - 1:
            tsl = jnp.maximum(tsl, 0.0)
    return jnp.concatenate([rot, tsl], axis=-1)


if __name__ == "__main__":
    # Module config: head_dims[-1] must equal sub_dims[0]
    head_dims = [32, 64, 32]
    sub_dims = [32, 64, 16]
    batch = 8

    key = jax.random.PRNGKey(0)
    k_x, k_p = jax.random.split(key)
    x = jax.random.normal(k_x, (batch, head_dims[0]), dtype=jnp.float32)
    head_params, rot_params, tsl_params = make_mlpnet_params(
        k_p, head_dims, sub_dims)
    ref = mlpnet_reference(x, head_params, rot_params, tsl_params)

    # --- f32 path (v5e-oriented; default MXU precision matches the XLA ref).
    # For parity with a true-fp32 (torch/CPU) reference, set
    # precision=jax.lax.Precision.HIGHEST in both kernel and reference.
    w32, b32, width, out_dim = fuse_and_pack(
        head_params, rot_params, tsl_params, param_dtype=jnp.float32)
    out32 = mlpnet_forward(x, w32, b32, width=width, out_dim=out_dim)
    out32 = jax.block_until_ready(out32)
    assert out32.shape == (batch, 2 * sub_dims[-1]), out32.shape
    assert jnp.allclose(out32, ref, atol=1e-5, rtol=1e-5), "f32 mismatch vs reference"

    # --- bf16 weight/activation path (v6e/v7x-oriented: full-rate MXU, half
    # the slab / x / out HBM bytes).  Accumulation, bias and ReLU stay f32.
    wbf, bbf, width_bf, out_dim_bf = fuse_and_pack(
        head_params, rot_params, tsl_params, param_dtype=jnp.bfloat16)
    out_bf = mlpnet_forward(x.astype(jnp.bfloat16), wbf, bbf,
                            width=width_bf, out_dim=out_dim_bf)
    out_bf = jax.block_until_ready(out_bf)
    assert out_bf.shape == (batch, 2 * sub_dims[-1]), out_bf.shape
    assert jnp.allclose(out_bf.astype(jnp.float32), ref, atol=5e-2, rtol=5e-2), \
        "bf16 mismatch vs reference"

    print("KERNEL_OK")
</pallas_src>

<mosaic_0001>
module attributes {stable_mosaic.version = 11 : i64} {
  func.func @mlpnet_kernel(%arg0: i32, %arg1: memref<8x32xf32, #tpu.memory_space<vmem>>, %arg2: memref<512x128xf32, #tpu.memory_space<vmem>>, %arg3: memref<4x128xf32, #tpu.memory_space<vmem>>, %arg4: memref<8x128xf32, #tpu.memory_space<vmem>>) attributes {dimension_semantics = [#tpu.dimension_semantics<parallel>], iteration_bounds = array<i64: 1>, scalar_prefetch = 0 : i64, scratch_operands = 0 : i64, tpu.core_type = #tpu.core_type<tc>, window_params = [{transform_indices = @transform_0, window_bounds = array<i64: 8, 32>}, {pipeline_mode = #tpu.pipeline_mode<synchronous>, transform_indices = @transform_1, window_bounds = array<i64: 512, 128>}, {pipeline_mode = #tpu.pipeline_mode<synchronous>, transform_indices = @transform_2, window_bounds = array<i64: 4, 128>}, {transform_indices = @transform_3, window_bounds = array<i64: 8, 128>}]} {
    %c0 = arith.constant 0 : index
    %c0_0 = arith.constant 0 : index
    %0 = vector.load %arg1[%c0, %c0_0] : memref<8x32xf32, #tpu.memory_space<vmem>>, vector<8x32xf32>
    %c0_1 = arith.constant 0 : index
    %c0_2 = arith.constant 0 : index
    %1 = vector.load %arg2[%c0_1, %c0_2] : memref<512x128xf32, #tpu.memory_space<vmem>>, vector<32x128xf32>
    %c0_3 = arith.constant 0 : index
    %c0_4 = arith.constant 0 : index
    %2 = vector.load %arg3[%c0_3, %c0_4] : memref<4x128xf32, #tpu.memory_space<vmem>>, vector<1x128xf32>
    %cst = arith.constant dense<0.000000e+00> : vector<8x128xf32>
    %3 = tpu.matmul %0, %1, %cst {dimension_numbers = #tpu.dot_dimension_numbers<[1], [0], [0], [1], [0, 0, 1, 1], [], []>} : vector<8x32xf32>, vector<32x128xf32>, vector<8x128xf32> -> vector<8x128xf32>
    %4 = vector.broadcast %2 : vector<1x128xf32> to vector<8x128xf32>
    %5 = arith.addf %3, %4 : vector<8x128xf32>
    %cst_5 = arith.constant 0.000000e+00 : f32
    %6 = vector.broadcast %cst_5 : f32 to vector<8x128xf32>
    %7 = arith.maximumf %5, %6 : vector<8x128xf32>
    %c128 = arith.constant 128 : index
    %c0_6 = arith.constant 0 : index
    %8 = vector.load %arg2[%c128, %c0_6] : memref<512x128xf32, #tpu.memory_space<vmem>>, vector<128x128xf32>
    %c1 = arith.constant 1 : index
    %c0_7 = arith.constant 0 : index
    %9 = vector.load %arg3[%c1, %c0_7] : memref<4x128xf32, #tpu.memory_space<vmem>>, vector<1x128xf32>
    %cst_8 = arith.constant dense<0.000000e+00> : vector<8x128xf32>
    %10 = tpu.matmul %7, %8, %cst_8 {dimension_numbers = #tpu.dot_dimension_numbers<[1], [0], [0], [1], [0, 0, 1, 1], [], []>} : vector<8x128xf32>, vector<128x128xf32>, vector<8x128xf32> -> vector<8x128xf32>
    %11 = vector.broadcast %9 : vector<1x128xf32> to vector<8x128xf32>
    %12 = arith.addf %10, %11 : vector<8x128xf32>
    %cst_9 = arith.constant 0.000000e+00 : f32
    %13 = vector.broadcast %cst_9 : f32 to vector<8x128xf32>
    %14 = arith.maximumf %12, %13 : vector<8x128xf32>
    %c256 = arith.constant 256 : index
    %c0_10 = arith.constant 0 : index
    %15 = vector.load %arg2[%c256, %c0_10] : memref<512x128xf32, #tpu.memory_space<vmem>>, vector<128x128xf32>
    %c2 = arith.constant 2 : index
    %c0_11 = arith.constant 0 : index
    %16 = vector.load %arg3[%c2, %c0_11] : memref<4x128xf32, #tpu.memory_space<vmem>>, vector<1x128xf32>
    %cst_12 = arith.constant dense<0.000000e+00> : vector<8x128xf32>
    %17 = tpu.matmul %14, %15, %cst_12 {dimension_numbers = #tpu.dot_dimension_numbers<[1], [0], [0], [1], [0, 0, 1, 1], [], []>} : vector<8x128xf32>, vector<128x128xf32>, vector<8x128xf32> -> vector<8x128xf32>
    %18 = vector.broadcast %16 : vector<1x128xf32> to vector<8x128xf32>
    %19 = arith.addf %17, %18 : vector<8x128xf32>
    %cst_13 = arith.constant 0.000000e+00 : f32
    %20 = vector.broadcast %cst_13 : f32 to vector<8x128xf32>
    %21 = arith.maximumf %19, %20 : vector<8x128xf32>
    %c384 = arith.constant 384 : index
    %c0_14 = arith.constant 0 : index
    %22 = vector.load %arg2[%c384, %c0_14] : memref<512x128xf32, #tpu.memory_space<vmem>>, vector<128x128xf32>
    %c3 = arith.constant 3 : index
    %c0_15 = arith.constant 0 : index
    %23 = vector.load %arg3[%c3, %c0_15] : memref<4x128xf32, #tpu.memory_space<vmem>>, vector<1x128xf32>
    %cst_16 = arith.constant dense<0.000000e+00> : vector<8x128xf32>
    %24 = tpu.matmul %21, %22, %cst_16 {dimension_numbers = #tpu.dot_dimension_numbers<[1], [0], [0], [1], [0, 0, 1, 1], [], []>} : vector<8x128xf32>, vector<128x128xf32>, vector<8x128xf32> -> vector<8x128xf32>
    %25 = vector.broadcast %23 : vector<1x128xf32> to vector<8x128xf32>
    %26 = arith.addf %24, %25 : vector<8x128xf32>
    %c0_17 = arith.constant 0 : index
    %c0_18 = arith.constant 0 : index
    %27 = vector.load %arg4[%c0_17, %c0_18] : memref<8x128xf32, #tpu.memory_space<vmem>>, vector<8x128xf32>
    tpu.vector_store %arg4[%c0_17, %c0_18], %26 {strides = array<i32>} : memref<8x128xf32, #tpu.memory_space<vmem>>, vector<8x128xf32>,
    return
  }
  func.func @transform_0(%arg0: i32) -> (i32, i32) {
    %c0_i32 = arith.constant 0 : i32
    %c0_i32_0 = arith.constant 0 : i32
    return %arg0, %c0_i32 : i32, i32
  }
  func.func @transform_1(%arg0: i32) -> (i32, i32) {
    %c0_i32 = arith.constant 0 : i32
    %c0_i32_0 = arith.constant 0 : i32
    %c0_i32_1 = arith.constant 0 : i32
    return %c0_i32, %c0_i32_0 : i32, i32
  }
  func.func @transform_2(%arg0: i32) -> (i32, i32) {
    %c0_i32 = arith.constant 0 : i32
    %c0_i32_0 = arith.constant 0 : i32
    %c0_i32_1 = arith.constant 0 : i32
    return %c0_i32, %c0_i32_0 : i32, i32
  }
  func.func @transform_3(%arg0: i32) -> (i32, i32) {
    %c0_i32 = arith.constant 0 : i32
    %c0_i32_0 = arith.constant 0 : i32
    return %arg0, %c0_i32 : i32, i32
  }
}

</mosaic_0001>

<bundles_post_ra>
// kernel: tpu_custom_call.1
= control target key start
LH: loop header
LB: loop body
LE: loop exit
PB: predicated region body
PF: predicated region fallthrough
CT: control target
= control target key end

     0   :  { %8 = vsyncpa [#allocation3], 0  ;;  %s376_s0 = inlined_call_operand.hbm [shape: f32[8,32], index: 0, kind: input, shape index: {}]   ;;  %s377_s1 = inlined_call_operand.hbm [shape: f32[512,128], index: 1, kind: input, shape index: {}]   ;;  %s378_s2 = inlined_call_operand.hbm [shape: f32[4,128], index: 2, kind: input, shape index: {}]   ;;  %s379_s3 = inlined_call_operand.hbm [shape: f32[8,128], index: 3, kind: output, shape index: {}]  }
   0x1   :  { %9 = vsyncpa [#allocation6], 0  ;;  %s26_s14 = sshll.u32 %s377_s1, 4  ;;  %s27_s14 = int_to_ptr.hbm [resolvable:$true] %s26_s14 }
   0x2   :  { %10 = vsyncpa [#allocation4], 0  ;;  %s338_s15 = smov [#allocation5]   ;;  %s16_s19 = sshll.u32 %s376_s0, 4  ;;  %s17_s19 = int_to_ptr.hbm [resolvable:$true] %s16_s19 }
   0x3   :  { %s28_s16 = sshll.u32 %s338_s15, 4  ;;  %s339_s20 = smov 128   ;;  %s29_s16 = int_to_ptr.vmem [resolvable:$true] %s28_s16 }
   0x4   :  { %s340_s21 = smov 8   ;;  %s341_s22 = smov [#allocation2]  }
   0x5   :  { %34 = dma.hbm_to_vmem [thread:$0]  %s27_s14, 8192, %s29_s16, [#allocation6], %s339_s20, %s339_s20, %s340_s21  }
   0x6   :  { %s18_s23 = sshll.u32 %s341_s22, 4  ;;  %s40_s26 = sshll.u32 %s378_s2, 4  ;;  %s19_s23 = int_to_ptr.vmem [resolvable:$true] %s18_s23  ;;  %s41_s26 = int_to_ptr.hbm [resolvable:$true] %s40_s26 }
   0x7   :  { %21 = dma.hbm_to_vmem [thread:$0]  %s17_s19, 128, %s19_s23, [#allocation3]  }
   0x8   :  { %s342_s1 = smov [#allocation7]  }
   0x9   :  { %s42_s27 = sshll.u32 %s342_s1, 4  ;;  %s43_s27 = int_to_ptr.vmem [resolvable:$true] %s42_s27 }
   0xa   :  { %45 = dma.hbm_to_vmem [thread:$0]  %s41_s26, 64, %s43_s27, [#allocation6]  }
   0xb   :  { %332 = dma.done.wait [#allocation3], 128  }
   0xc   :  { %333 = vsyncadd [#allocation3], 4294967168 }
   0xd   :  { %334 = dma.done.wait [#allocation6], 8256  }
   0xe   :  { %335 = vsyncadd [#allocation6], 4294959040  ;;  %v62_v0 = vld [vmem:[#allocation5 + $0x18] sm:$0xff]  ;;  %v61_v1 = vld [vmem:[#allocation5 + $0x10] sm:$0xff]  ;;  %vm65_vm0 = vcmask 261120   ;;  %s343_s0 = smov [#allocation8]  }
   0xf   :  { %81 = vmatpush.msra.mxu0 %v62_v0  ;;  %v105_v2 = vld [vmem:[#allocation5 + $0xf8] sm:$0xff]  ;;  %v60_v3 = vld [vmem:[#allocation5 + $0x8] sm:$0xff]  ;;  %v104_v4 = vld [vmem:[#allocation5 + $0xf0] sm:$0xff]  ;;  %s212_s2 = sshll.u32 %s343_s0, 4  ;;  %s214_s30 = sshll.u32 %s379_s3, 4  ;;  %s213_s2 = int_to_ptr.vmem [resolvable:$true] %s212_s2  ;;  %s215_s30 = int_to_ptr.hbm [resolvable:$true] %s214_s30 }
  0x10   :  { %108 = vmatpush.msra.mxu1 %v105_v2  ;;  %v103_v5 = vld [vmem:[#allocation5 + $0xe8] sm:$0xff]  ;;  %v59_v6 = vld [vmem:[#allocation5] sm:$0xff]  ;;  %v58_v7 = vld [vmem:[#allocation2] sm:$0xff] }
  0x11   :  { %82 = vmatpush.msra.mxu0 %v61_v1  ;;  %v102_v8 = vld [vmem:[#allocation5 + $0xe0] sm:$0xff]  ;;  %v101_v9 = vld [vmem:[#allocation5 + $0xd8] sm:$0xff]  ;;  %v100_v10 = vld [vmem:[#allocation5 + $0xd0] sm:$0xff] }
  0x12   :  { %109 = vmatpush.msra.mxu1 %v104_v4  ;;  %v99_v11 = vld [vmem:[#allocation5 + $0xc8] sm:$0xff]  ;;  %v98_v12 = vld [vmem:[#allocation5 + $0xc0] sm:$0xff]  ;;  %v97_v13 = vld [vmem:[#allocation5 + $0xb8] sm:$0xff] }
  0x13   :  { %83 = vmatpush.msra.mxu0 %v60_v3  ;;  %v96_v14 = vld [vmem:[#allocation5 + $0xb0] sm:$0xff]  ;;  %v95_v15 = vld [vmem:[#allocation5 + $0xa8] sm:$0xff]  ;;  %v94_v16 = vld [vmem:[#allocation5 + $0xa0] sm:$0xff] }
  0x14   :  { %110 = vmatpush.msra.mxu1 %v103_v5  ;;  %v93_v17 = vld [vmem:[#allocation5 + $0x98] sm:$0xff]  ;;  %v92_v18 = vld [vmem:[#allocation5 + $0x90] sm:$0xff]  ;;  %v91_v19 = vld [vmem:[#allocation5 + $0x88] sm:$0xff] }
  0x15   :  { %84 = vmatpush.msra.mxu0 %v59_v6  ;;  %v90_v20 = vld [vmem:[#allocation5 + $0x80] sm:$0xff]  ;;  %v144_v21 = vld [vmem:[#allocation5 + $0x178] sm:$0xff]  ;;  %v143_v22 = vld [vmem:[#allocation5 + $0x170] sm:$0xff] }
  0x16   :  { %225 = vmatmul.msk.f32.vlgmr.msra.gmra.mxu0 %vm65_vm0, %v58_v7  ;;  %111 = vmatpush.msra.mxu1 %v102_v8  ;;  %v142_v23 = vld [vmem:[#allocation5 + $0x168] sm:$0xff]  ;;  %v141_v24 = vld [vmem:[#allocation5 + $0x160] sm:$0xff]  ;;  %v140_v25 = vld [vmem:[#allocation5 + $0x158] sm:$0xff] }
  0x17   :  { %147 = vmatpush.msra.mxu2 %v144_v21  ;;  %v139_v26 = vld [vmem:[#allocation5 + $0x150] sm:$0xff]  ;;  %v138_v27 = vld [vmem:[#allocation5 + $0x148] sm:$0xff]  ;;  %v137_v28 = vld [vmem:[#allocation5 + $0x140] sm:$0xff] }
  0x18   :  { %112 = vmatpush.msra.mxu1 %v101_v9  ;;  %v136_v29 = vld [vmem:[#allocation5 + $0x138] sm:$0xff]  ;;  %v135_v30 = vld [vmem:[#allocation5 + $0x130] sm:$0xff]  ;;  %v134_v31 = vld [vmem:[#allocation5 + $0x128] sm:$0xff] }
  0x19   :  { %148 = vmatpush.msra.mxu2 %v143_v22  ;;  %v133_v32 = vld [vmem:[#allocation5 + $0x120] sm:$0xff]  ;;  %v132_v33 = vld [vmem:[#allocation5 + $0x118] sm:$0xff]  ;;  %v131_v38 = vld [vmem:[#allocation5 + $0x110] sm:$0xff] }
  0x1a   :  { %113 = vmatpush.msra.mxu1 %v100_v10  ;;  %v232_v34 = vld [vmem:[#allocation7] ss:$0 sm:$0xff]  ;;  %v130_v39 = vld [vmem:[#allocation5 + $0x108] sm:$0xff]  ;;  %v183_v41 = vld [vmem:[#allocation5 + $0x1f8] sm:$0xff] }
  0x1b   :  { %149 = vmatpush.msra.mxu2 %v142_v23  ;;  %v129_v40 = vld [vmem:[#allocation5 + $0x100] sm:$0xff]  ;;  %v182_v42 = vld [vmem:[#allocation5 + $0x1f0] sm:$0xff]  ;;  %186 = vmatpush.msra.mxu3 %v183_v41  ;;  %v181_v43 = vld [vmem:[#allocation5 + $0x1e8] sm:$0xff] }
  0x1c   :  { %114 = vmatpush.msra.mxu1 %v99_v11  ;;  %v180_v44 = vld [vmem:[#allocation5 + $0x1e0] sm:$0xff]  ;;  %v179_v45 = vld [vmem:[#allocation5 + $0x1d8] sm:$0xff]  ;;  %v178_v46 = vld [vmem:[#allocation5 + $0x1d0] sm:$0xff] }
  0x1d   :  { %150 = vmatpush.msra.mxu2 %v141_v24  ;;  %187 = vmatpush.msra.mxu3 %v182_v42  ;;  %v177_v47 = vld [vmem:[#allocation5 + $0x1c8] sm:$0xff]  ;;  %v176_v48 = vld [vmem:[#allocation5 + $0x1c0] sm:$0xff]  ;;  %v175_v49 = vld [vmem:[#allocation5 + $0x1b8] sm:$0xff] }
  0x1e   :  { %115 = vmatpush.msra.mxu1 %v98_v12  ;;  %v174_v50 = vld [vmem:[#allocation5 + $0x1b0] sm:$0xff]  ;;  %v173_v51 = vld [vmem:[#allocation5 + $0x1a8] sm:$0xff]  ;;  %v172_v52 = vld [vmem:[#allocation5 + $0x1a0] sm:$0xff] }
  0x1f   :  { %151 = vmatpush.msra.mxu2 %v140_v25  ;;  %188 = vmatpush.msra.mxu3 %v181_v43  ;;  %v171_v53 = vld [vmem:[#allocation5 + $0x198] sm:$0xff]  ;;  %v233_v54 = vld [vmem:[#allocation7 + $0x1] ss:$0 sm:$0xff]  ;;  %v170_v58 = vld [vmem:[#allocation5 + $0x190] sm:$0xff] }
  0x20   :  { %116 = vmatpush.msra.mxu1 %v97_v13  ;;  %v169_v59 = vld [vmem:[#allocation5 + $0x188] sm:$0xff]  ;;  %v168_v60 = vld [vmem:[#allocation5 + $0x180] sm:$0xff] }
  0x21   :  { %152 = vmatpush.msra.mxu2 %v139_v26  ;;  %189 = vmatpush.msra.mxu3 %v180_v44  ;;  %v234_v61 = vld [vmem:[#allocation7 + $0x2] ss:$0 sm:$0xff]  ;;  %v235_v1 = vld [vmem:[#allocation7 + $0x3] ss:$0 sm:$0xff] }
  0x22   :  { %117 = vmatpush.msra.mxu1 %v96_v14 }
  0x23   :  { %153 = vmatpush.msra.mxu2 %v138_v27  ;;  %190 = vmatpush.msra.mxu3 %v179_v45 }
  0x24   :  { %118 = vmatpush.msra.mxu1 %v95_v15 }
  0x25   :  { %154 = vmatpush.msra.mxu2 %v137_v28  ;;  %191 = vmatpush.msra.mxu3 %v178_v46 }
  0x26   :  { %119 = vmatpush.msra.mxu1 %v94_v16 }
  0x27   :  { %155 = vmatpush.msra.mxu2 %v136_v29  ;;  %192 = vmatpush.msra.mxu3 %v177_v47 }
  0x28   :  { %120 = vmatpush.msra.mxu1 %v93_v17 }
  0x29   :  { %156 = vmatpush.msra.mxu2 %v135_v30  ;;  %193 = vmatpush.msra.mxu3 %v176_v48 }
  0x2a   :  { %121 = vmatpush.msra.mxu1 %v92_v18 }
  0x2b   :  { %157 = vmatpush.msra.mxu2 %v134_v31  ;;  %194 = vmatpush.msra.mxu3 %v175_v49 }
  0x2c   :  { %122 = vmatpush.msra.mxu1 %v91_v19 }
  0x2d   :  { %158 = vmatpush.msra.mxu2 %v133_v32  ;;  %195 = vmatpush.msra.mxu3 %v174_v50 }
  0x2e   :  { %123 = vmatpush.msra.mxu1 %v90_v20 }
  0x2f   :  { %159 = vmatpush.msra.mxu2 %v132_v33  ;;  %196 = vmatpush.msra.mxu3 %v173_v51 }
  0x31   :  { %160 = vmatpush.msra.mxu2 %v131_v38  ;;  %197 = vmatpush.msra.mxu3 %v172_v52 }
  0x33   :  { %161 = vmatpush.msra.mxu2 %v130_v39  ;;  %198 = vmatpush.msra.mxu3 %v171_v53 }
  0x35   :  { %162 = vmatpush.msra.mxu2 %v129_v40  ;;  %199 = vmatpush.msra.mxu3 %v170_v58 }
  0x37   :  { %200 = vmatpush.msra.mxu3 %v169_v59 }
  0x39   :  { %201 = vmatpush.msra.mxu3 %v168_v60 }
  0x93   :  { %v86_v35 = vpop.f32.mrf.mxu0 }
  0x94   :  { %v87_v36 = vadd.f32 %v232_v34, %v86_v35 }
  0x96   :  { %v89_v37 = vmax.f32 %v87_v36, 0.0 }
  0x98   :  { %124 = vmatmul.f32.vlgmr.msra.gmra.mxu1 %v89_v37 }
 0x115   :  { %v125_v55 = vpop.f32.mrf.mxu1 }
 0x116   :  { %v126_v56 = vadd.f32 %v233_v54, %v125_v55 }
 0x118   :  { %v128_v57 = vmax.f32 %v126_v56, 0.0 }
 0x11a   :  { %163 = vmatmul.f32.vlgmr.msra.gmra.mxu2 %v128_v57 }
 0x19d   :  { %v164_v62 = vpop.f32.mrf.mxu2 }
 0x19e   :  { %v165_v63 = vadd.f32 %v234_v61, %v164_v62 }
 0x1a0   :  { %v167_v0 = vmax.f32 %v165_v63, 0.0 }
 0x1a2   :  { %202 = vmatmul.f32.vlgmr.msra.gmra.mxu3 %v167_v0 }
 0x225   :  { %v203_v2 = vpop.f32.mrf.mxu3 }
 0x226   :  { %v204_v3 = vadd.f32 %v235_v1, %v203_v2 }
 0x228   :  { %206 = vst [vmem:[#allocation8] sm:$0xff] %v204_v3 }
 0x229   :  { %217 = dma.vmem_to_hbm [thread:$0]  %s213_s2, 128, %s215_s30, [#allocation4]  }
 0x22a   :  { %336 = dma.done.wait [#allocation4], 128  }
 0x22b   :  { %337 = vsyncadd [#allocation4], 4294967168 }
 0x22c   :  { %222 = vsyncpa [#allocation3], 1 }
 0x22d   :  { %223 = vsyncpa [#allocation6], 1 }
 0x22e   :  { %224 = vsyncpa [#allocation4], 1 }

</bundles_post_ra>
